<compile_context>
chip_gen: v5e
topology: v5e:2x2
jax: 0.10.0
libtpu: 0.0.40
codegen_flags: <defaults>
</compile_context>

<pallas_src>
import functools
import math

import jax
import jax.numpy as jnp
from jax.experimental import pallas as pl
from jax.experimental.pallas import tpu as pltpu


def _layernorm(x, gamma, beta, eps=1e-5):
    # x: (M, D) f32; gamma, beta: (1, D) f32  (matches nn.LayerNorm defaults)
    mu = jnp.mean(x, axis=-1, keepdims=True)
    var = jnp.mean((x - mu) ** 2, axis=-1, keepdims=True)
    return (x - mu) * jax.lax.rsqrt(var + eps) * gamma + beta


def encoder_layer_kernel(x_ref, mask_ref,
                         wqkv_ref, bqkv_ref, wo_ref, bo_ref,
                         g1_ref, be1_ref, g2_ref, be2_ref,
                         w1_ref, bf1_ref, w2_ref, bf2_ref,
                         out_ref, *, n_heads):
    f32, bf16 = jnp.float32, jnp.bfloat16
    Bt, S, D = x_ref.shape
    H = n_heads
    dk = D // H
    M = Bt * S

    x = x_ref[...].reshape(M, D)                              # (M, D) f32

    # ---- sublayer 0: self-attention over LayerNorm(x), residual add --------
    nx = _layernorm(x, g1_ref[...], be1_ref[...])

    # Fused QKV projection: one wide MXU matmul, bf16 operands / f32 accumulate.
    qkv = jnp.dot(nx.astype(bf16), wqkv_ref[...],
                  preferred_element_type=f32) + bqkv_ref[...]  # (M, 3D)
    qkv = qkv.reshape(Bt, S, 3 * D)
    q = qkv[:, :, 0 * D:1 * D]        # 1/sqrt(d_k) already folded into Wq/bq
    k = qkv[:, :, 1 * D:2 * D]
    v = qkv[:, :, 2 * D:3 * D]

    # Additive mask bias built in-kernel from the int8 mask (compare+select).
    bias = jnp.where(mask_ref[...].astype(f32) == 0.0, -1e9, 0.0)  # (Bt, S, S)

    # Per-head scores / softmax (f32) / PV. Heads are static lane slices.
    ctx_heads = []
    for h in range(H):
        qh = q[:, :, h * dk:(h + 1) * dk].astype(bf16)
        kh = k[:, :, h * dk:(h + 1) * dk].astype(bf16)
        vh = v[:, :, h * dk:(h + 1) * dk].astype(bf16)
        s = jnp.einsum('bqd,bkd->bqk', qh, kh,
                       preferred_element_type=f32) + bias       # (Bt, S, S)
        m = jnp.max(s, axis=-1, keepdims=True)
        e = jnp.exp(s - m)                                      # f32 exp (v5e)
        p = e * pl.reciprocal(jnp.sum(e, axis=-1, keepdims=True), approx=True)
        # dropout on attention weights: identity in eval mode.
        ctx_heads.append(jnp.einsum('bqk,bkd->bqd', p.astype(bf16), vh,
                                    preferred_element_type=f32))

    # concat(heads) @ Wo: single matmul with contraction H*d_k = D.
    ctx = jnp.concatenate(ctx_heads, axis=-1).reshape(M, D)
    attn = jnp.dot(ctx.astype(bf16), wo_ref[...],
                   preferred_element_type=f32) + bo_ref[...]
    x1 = x + attn                                               # residual, f32

    # ---- sublayer 1: FFN over LayerNorm(x1), residual add -------------------
    # TODO(synk): tile the hidden dim F with a VMEM accumulator before scaling
    # D/F (needed to stay within v7x's 64 MiB VMEM at production shapes).
    nx2 = _layernorm(x1, g2_ref[...], be2_ref[...])
    hdn = jnp.dot(nx2.astype(bf16), w1_ref[...],
                  preferred_element_type=f32) + bf1_ref[...]
    hdn = jnp.maximum(hdn, 0.0)                                 # ReLU (f32)
    y = jnp.dot(hdn.astype(bf16), w2_ref[...],
                preferred_element_type=f32) + bf2_ref[...]
    # dropouts inside FFN / sublayer wrappers: identity in eval mode.

    out_ref[...] = (x1 + y).reshape(Bt, S, D)


def _prep_params(params, n_heads):
    """One-time weight prep (outside the kernel): fuse Wq|Wk|Wv, fold the
    1/sqrt(d_k) attention scale into Wq/bq, cast matmul operands to bf16."""
    D = params["wq"].shape[0]
    dk = D // n_heads
    scale = 1.0 / math.sqrt(dk)
    bf16, f32 = jnp.bfloat16, jnp.float32

    wqkv = jnp.concatenate(
        [params["wq"] * scale, params["wk"], params["wv"]], axis=1)   # (D, 3D)
    bqkv = jnp.concatenate(
        [params["bq"] * scale, params["bk"], params["bv"]], axis=1)   # (1, 3D)

    return dict(
        wqkv=wqkv.astype(bf16), bqkv=bqkv.astype(f32),
        wo=params["wo"].astype(bf16), bo=params["bo"].astype(f32),
        g1=params["g1"].astype(f32), be1=params["be1"].astype(f32),
        g2=params["g2"].astype(f32), be2=params["be2"].astype(f32),
        w1=params["w1"].astype(bf16), bf1=params["bf1"].astype(f32),
        w2=params["w2"].astype(bf16), bf2=params["bf2"].astype(f32),
    )


def _pick_batch_tile(B, S, min_rows=256):
    """Batch rows per grid step: fold batch into the matmul M dim (target
    >= min_rows) while keeping >= 2 grid steps when possible (v7x: 2 TCs)."""
    divisors = [d for d in range(1, B + 1) if B % d == 0]
    target = max(1, min_rows // max(S, 1))
    cands = [d for d in divisors if d <= target] or [1]
    bt = max(cands)
    if B >= 2 and B // bt < 2:
        two_step = [d for d in cands if B // d >= 2]
        if two_step:
            bt = max(two_step)
    return bt


def encoder_layer(x, mask, params, n_heads):
    B, S, D = x.shape
    F = params["w1"].shape[1]
    dk = D // n_heads
    p = _prep_params(params, n_heads)

    # int8 mask (bias is built inside the kernel) -> half the mask HBM bytes.
    mask_i8 = (mask != 0).astype(jnp.int8)

    Bt = _pick_batch_tile(B, S)
    grid = (B // Bt,)

    def const_spec(shape):
        zeros = (0,) * len(shape)
        idx = lambda b: zeros
        # Constant weights never change across the grid -> single-buffer them
        # (halves their VMEM footprint; matters most on v7x's 64 MiB VMEM).
        if hasattr(pl, "Buffered"):
            try:
                return pl.BlockSpec(shape, idx, pipeline_mode=pl.Buffered(1))
            except TypeError:
                pass
        return pl.BlockSpec(shape, idx)

    in_specs = [
        pl.BlockSpec((Bt, S, D), lambda b: (b, 0, 0)),          # x
        pl.BlockSpec((Bt, S, S), lambda b: (b, 0, 0)),          # mask (int8)
        const_spec((D, 3 * D)), const_spec((1, 3 * D)),         # Wqkv, bqkv
        const_spec((D, D)), const_spec((1, D)),                 # Wo, bo
        const_spec((1, D)), const_spec((1, D)),                 # ln1 g, b
        const_spec((1, D)), const_spec((1, D)),                 # ln2 g, b
        const_spec((D, F)), const_spec((1, F)),                 # W1, b1
        const_spec((F, D)), const_spec((1, D)),                 # W2, b2
    ]

    flops = (2 * B * S * D * 3 * D            # fused QKV projection
             + 4 * B * n_heads * S * S * dk   # scores + PV
             + 2 * B * S * D * D              # output projection
             + 4 * B * S * D * F)             # FFN (two matmuls)
    bytes_accessed = (x.size * 4 + mask_i8.size + B * S * D * 4
                      + 2 * (3 * D * D + D * D + 2 * D * F) + 4 * (6 * D + F))
    cost = pl.CostEstimate(flops=int(flops),
                           transcendentals=int(B * n_heads * S * S),
                           bytes_accessed=int(bytes_accessed))

    kernel = functools.partial(encoder_layer_kernel, n_heads=n_heads)

    # Output kept f32 to match the reference module; if the downstream consumer
    # accepts bf16, switch out_shape dtype to halve writeback bytes.
    return pl.pallas_call(
        kernel,
        out_shape=jax.ShapeDtypeStruct((B, S, D), jnp.float32),
        grid=grid,
        in_specs=in_specs,
        out_specs=pl.BlockSpec((Bt, S, D), lambda b: (b, 0, 0)),
        compiler_params=pltpu.CompilerParams(
            dimension_semantics=("parallel",),
            vmem_limit_bytes=48 * 1024 * 1024),
        cost_estimate=cost,
    )(x, mask_i8,
      p["wqkv"], p["bqkv"], p["wo"], p["bo"],
      p["g1"], p["be1"], p["g2"], p["be2"],
      p["w1"], p["bf1"], p["w2"], p["bf2"])


def reference_encoder_layer(x, mask, p, n_heads):
    """Pure-JAX f32 reference replicating the PyTorch forward (eval mode)."""
    D = x.shape[-1]
    d_k = D // n_heads

    def ln(x, g, b):
        mu = x.mean(-1, keepdims=True)
        var = ((x - mu) ** 2).mean(-1, keepdims=True)
        return (x - mu) / jnp.sqrt(var + 1e-5) * g + b

    nx = ln(x, p["g1"], p["be1"])
    q = nx @ p["wq"] + p["bq"]
    k = nx @ p["wk"] + p["bk"]
    v = nx @ p["wv"] + p["bv"]

    def chunk(t):  # (B,S,D) -> (B,H,S,dk)
        B, S, _ = t.shape
        return t.reshape(B, S, n_heads, d_k).transpose(0, 2, 1, 3)

    qh, kh, vh = chunk(q), chunk(k), chunk(v)
    s = jnp.einsum("bhqd,bhkd->bhqk", qh, kh) / math.sqrt(d_k)
    s = jnp.where(mask[:, None, :, :] == 0, -1000000000.0, s)
    a = jax.nn.softmax(s, axis=-1)
    ctx = jnp.einsum("bhqk,bhkd->bhqd", a, vh)
    ctx = ctx.transpose(0, 2, 1, 3).reshape(x.shape)
    x1 = x + (ctx @ p["wo"] + p["bo"])

    nx2 = ln(x1, p["g2"], p["be2"])
    h = jnp.maximum(nx2 @ p["w1"] + p["bf1"], 0.0)
    return x1 + (h @ p["w2"] + p["bf2"])


def init_params(key, d_model, ff_units):
    ks = jax.random.split(key, 12)
    u = lambda k, shape, fan_in: jax.random.uniform(
        k, shape, jnp.float32, -1.0 / math.sqrt(fan_in), 1.0 / math.sqrt(fan_in))
    D, F = d_model, ff_units
    return {
        "wq": u(ks[0], (D, D), D), "bq": u(ks[1], (1, D), D),
        "wk": u(ks[2], (D, D), D), "bk": u(ks[3], (1, D), D),
        "wv": u(ks[4], (D, D), D), "bv": u(ks[5], (1, D), D),
        "wo": u(ks[6], (D, D), D), "bo": u(ks[7], (1, D), D),
        "g1": jnp.ones((1, D), jnp.float32), "be1": jnp.zeros((1, D), jnp.float32),
        "g2": jnp.ones((1, D), jnp.float32), "be2": jnp.zeros((1, D), jnp.float32),
        "w1": u(ks[8], (D, F), D), "bf1": u(ks[9], (1, F), D),
        "w2": u(ks[10], (F, D), F), "bf2": u(ks[11], (1, D), F),
    }


if __name__ == "__main__":
    # Small shapes for the test; production shapes should keep D, F multiples
    # of 128 and d_k >= 128 (lane-dense layouts are the biggest single lever).
    B, S, D, F, H = 2, 8, 32, 64, 4

    key = jax.random.PRNGKey(0)
    kx, kp = jax.random.split(key)
    x = jax.random.normal(kx, (B, S, D), jnp.float32)
    mask = jnp.ones((B, S, S), jnp.float32)   # all positions visible
    params = init_params(kp, D, F)

    out = jax.block_until_ready(encoder_layer(x, mask, params, H))
    ref = reference_encoder_layer(x, mask, params, H)

    assert out.shape == (B, S, D)
    # bf16 matmul operands (f32 accumulate) + approx-reciprocal softmax vs. the
    # pure-f32 reference -> compare with bf16-appropriate tolerances.
    assert jnp.allclose(out, ref, atol=5e-2, rtol=5e-2), "mismatch vs JAX reference"

    print("KERNEL_OK")
</pallas_src>

<mosaic_0001>
module attributes {stable_mosaic.version = 11 : i64} {
  func.func @encoder_layer_kernel(%arg0: i32, %arg1: memref<1x8x32xf32, #tpu.memory_space<vmem>>, %arg2: memref<1x8x8xi8, #tpu.memory_space<vmem>>, %arg3: memref<32x96xbf16, #tpu.memory_space<vmem>>, %arg4: memref<1x96xf32, #tpu.memory_space<vmem>>, %arg5: memref<32x32xbf16, #tpu.memory_space<vmem>>, %arg6: memref<1x32xf32, #tpu.memory_space<vmem>>, %arg7: memref<1x32xf32, #tpu.memory_space<vmem>>, %arg8: memref<1x32xf32, #tpu.memory_space<vmem>>, %arg9: memref<1x32xf32, #tpu.memory_space<vmem>>, %arg10: memref<1x32xf32, #tpu.memory_space<vmem>>, %arg11: memref<32x64xbf16, #tpu.memory_space<vmem>>, %arg12: memref<1x64xf32, #tpu.memory_space<vmem>>, %arg13: memref<64x32xbf16, #tpu.memory_space<vmem>>, %arg14: memref<1x32xf32, #tpu.memory_space<vmem>>, %arg15: memref<1x8x32xf32, #tpu.memory_space<vmem>>) attributes {dimension_semantics = [#tpu.dimension_semantics<parallel>], iteration_bounds = array<i64: 2>, scalar_prefetch = 0 : i64, scratch_operands = 0 : i64, tpu.core_type = #tpu.core_type<tc>, window_params = [{transform_indices = @transform_0, window_bounds = array<i64: 1, 8, 32>}, {transform_indices = @transform_1, window_bounds = array<i64: 1, 8, 8>}, {pipeline_mode = #tpu.pipeline_mode<synchronous>, transform_indices = @transform_2, window_bounds = array<i64: 32, 96>}, {pipeline_mode = #tpu.pipeline_mode<synchronous>, transform_indices = @transform_3, window_bounds = array<i64: 1, 96>}, {pipeline_mode = #tpu.pipeline_mode<synchronous>, transform_indices = @transform_4, window_bounds = array<i64: 32, 32>}, {pipeline_mode = #tpu.pipeline_mode<synchronous>, transform_indices = @transform_5, window_bounds = array<i64: 1, 32>}, {pipeline_mode = #tpu.pipeline_mode<synchronous>, transform_indices = @transform_6, window_bounds = array<i64: 1, 32>}, {pipeline_mode = #tpu.pipeline_mode<synchronous>, transform_indices = @transform_7, window_bounds = array<i64: 1, 32>}, {pipeline_mode = #tpu.pipeline_mode<synchronous>, transform_indices = @transform_8, window_bounds = array<i64: 1, 32>}, {pipeline_mode = #tpu.pipeline_mode<synchronous>, transform_indices = @transform_9, window_bounds = array<i64: 1, 32>}, {pipeline_mode = #tpu.pipeline_mode<synchronous>, transform_indices = @transform_10, window_bounds = array<i64: 32, 64>}, {pipeline_mode = #tpu.pipeline_mode<synchronous>, transform_indices = @transform_11, window_bounds = array<i64: 1, 64>}, {pipeline_mode = #tpu.pipeline_mode<synchronous>, transform_indices = @transform_12, window_bounds = array<i64: 64, 32>}, {pipeline_mode = #tpu.pipeline_mode<synchronous>, transform_indices = @transform_13, window_bounds = array<i64: 1, 32>}, {transform_indices = @transform_14, window_bounds = array<i64: 1, 8, 32>}]} {
    %c0 = arith.constant 0 : index
    %c0_0 = arith.constant 0 : index
    %c0_1 = arith.constant 0 : index
    %0 = vector.load %arg1[%c0, %c0_0, %c0_1] : memref<1x8x32xf32, #tpu.memory_space<vmem>>, vector<1x8x32xf32>
    %1 = vector.shape_cast %0 : vector<1x8x32xf32> to vector<8x32xf32>
    %c0_2 = arith.constant 0 : index
    %c0_3 = arith.constant 0 : index
    %2 = vector.load %arg7[%c0_2, %c0_3] : memref<1x32xf32, #tpu.memory_space<vmem>>, vector<1x32xf32>
    %c0_4 = arith.constant 0 : index
    %c0_5 = arith.constant 0 : index
    %3 = vector.load %arg8[%c0_4, %c0_5] : memref<1x32xf32, #tpu.memory_space<vmem>>, vector<1x32xf32>
    %cst = arith.constant dense<0.000000e+00> : vector<8xf32>
    %4 = vector.multi_reduction <add>, %1, %cst [1] : vector<8x32xf32> to vector<8xf32>
    %5 = vector.shape_cast %4 : vector<8xf32> to vector<8x1xf32>
    %cst_6 = arith.constant 3.200000e+01 : f32
    %6 = vector.broadcast %cst_6 : f32 to vector<8x1xf32>
    %7 = arith.divf %5, %6 : vector<8x1xf32>
    %8 = vector.broadcast %7 : vector<8x1xf32> to vector<8x32xf32>
    %9 = arith.subf %1, %8 : vector<8x32xf32>
    %10 = arith.mulf %9, %9 : vector<8x32xf32>
    %cst_7 = arith.constant dense<0.000000e+00> : vector<8xf32>
    %11 = vector.multi_reduction <add>, %10, %cst_7 [1] : vector<8x32xf32> to vector<8xf32>
    %12 = vector.shape_cast %11 : vector<8xf32> to vector<8x1xf32>
    %cst_8 = arith.constant 3.200000e+01 : f32
    %13 = vector.broadcast %cst_8 : f32 to vector<8x1xf32>
    %14 = arith.divf %12, %13 : vector<8x1xf32>
    %15 = vector.broadcast %7 : vector<8x1xf32> to vector<8x32xf32>
    %16 = arith.subf %1, %15 : vector<8x32xf32>
    %cst_9 = arith.constant 9.99999974E-6 : f32
    %17 = vector.broadcast %cst_9 : f32 to vector<8x1xf32>
    %18 = arith.addf %14, %17 : vector<8x1xf32>
    %19 = math.rsqrt %18 : vector<8x1xf32>
    %20 = vector.broadcast %19 : vector<8x1xf32> to vector<8x32xf32>
    %21 = arith.mulf %16, %20 : vector<8x32xf32>
    %22 = vector.broadcast %2 : vector<1x32xf32> to vector<8x32xf32>
    %23 = arith.mulf %21, %22 : vector<8x32xf32>
    %24 = vector.broadcast %3 : vector<1x32xf32> to vector<8x32xf32>
    %25 = arith.addf %23, %24 : vector<8x32xf32>
    %26 = arith.truncf %25 : vector<8x32xf32> to vector<8x32xbf16>
    %c0_10 = arith.constant 0 : index
    %c0_11 = arith.constant 0 : index
    %27 = vector.load %arg3[%c0_10, %c0_11] : memref<32x96xbf16, #tpu.memory_space<vmem>>, vector<32x96xbf16>
    %cst_12 = arith.constant dense<0.000000e+00> : vector<8x96xf32>
    %28 = tpu.matmul %26, %27, %cst_12 {dimension_numbers = #tpu.dot_dimension_numbers<[1], [0], [0], [1], [0, 0, 1, 1], [], []>} : vector<8x32xbf16>, vector<32x96xbf16>, vector<8x96xf32> -> vector<8x96xf32>
    %c0_13 = arith.constant 0 : index
    %c0_14 = arith.constant 0 : index
    %29 = vector.load %arg4[%c0_13, %c0_14] : memref<1x96xf32, #tpu.memory_space<vmem>>, vector<1x96xf32>
    %30 = vector.broadcast %29 : vector<1x96xf32> to vector<8x96xf32>
    %31 = arith.addf %28, %30 : vector<8x96xf32>
    %32 = vector.shape_cast %31 : vector<8x96xf32> to vector<1x8x96xf32>
    %33 = vector.extract_strided_slice %32 {offsets = [0, 0, 0], sizes = [1, 8, 32], strides = [1, 1, 1]} : vector<1x8x96xf32> to vector<1x8x32xf32>
    %34 = vector.extract_strided_slice %32 {offsets = [0, 0, 32], sizes = [1, 8, 32], strides = [1, 1, 1]} : vector<1x8x96xf32> to vector<1x8x32xf32>
    %35 = vector.extract_strided_slice %32 {offsets = [0, 0, 64], sizes = [1, 8, 32], strides = [1, 1, 1]} : vector<1x8x96xf32> to vector<1x8x32xf32>
    %c0_15 = arith.constant 0 : index
    %c0_16 = arith.constant 0 : index
    %c0_17 = arith.constant 0 : index
    %36 = vector.load %arg2[%c0_15, %c0_16, %c0_17] : memref<1x8x8xi8, #tpu.memory_space<vmem>>, vector<1x8x8xi8>
    %37 = arith.sitofp %36 : vector<1x8x8xi8> to vector<1x8x8xf32>
    %cst_18 = arith.constant 0.000000e+00 : f32
    %38 = vector.broadcast %cst_18 : f32 to vector<1x8x8xf32>
    %39 = arith.cmpf oeq, %37, %38 : vector<1x8x8xf32>
    %cst_19 = arith.constant -1.000000e+09 : f32
    %cst_20 = arith.constant 0.000000e+00 : f32
    %40 = vector.broadcast %cst_19 : f32 to vector<1x8x8xf32>
    %41 = vector.broadcast %cst_20 : f32 to vector<1x8x8xf32>
    %42 = arith.select %39, %40, %41 : vector<1x8x8xi1>, vector<1x8x8xf32>
    %43 = vector.extract_strided_slice %33 {offsets = [0, 0, 0], sizes = [1, 8, 8], strides = [1, 1, 1]} : vector<1x8x32xf32> to vector<1x8x8xf32>
    %44 = arith.truncf %43 : vector<1x8x8xf32> to vector<1x8x8xbf16>
    %45 = vector.extract_strided_slice %34 {offsets = [0, 0, 0], sizes = [1, 8, 8], strides = [1, 1, 1]} : vector<1x8x32xf32> to vector<1x8x8xf32>
    %46 = arith.truncf %45 : vector<1x8x8xf32> to vector<1x8x8xbf16>
    %47 = vector.extract_strided_slice %35 {offsets = [0, 0, 0], sizes = [1, 8, 8], strides = [1, 1, 1]} : vector<1x8x32xf32> to vector<1x8x8xf32>
    %48 = arith.truncf %47 : vector<1x8x8xf32> to vector<1x8x8xbf16>
    "tpu.trace_start"() <{level = 10 : i32, message = "bqd,bkd->bqk"}> : () -> ()
    %cst_21 = arith.constant dense<0.000000e+00> : vector<1x8x8xf32>
    %49 = tpu.matmul %44, %46, %cst_21 {dimension_numbers = #tpu.dot_dimension_numbers<[2], [2], [1], [1], [0, 0, 0, 1, 1, 1], [0], [0]>} : vector<1x8x8xbf16>, vector<1x8x8xbf16>, vector<1x8x8xf32> -> vector<1x8x8xf32>
    "tpu.trace_stop"() : () -> ()
    %50 = arith.addf %49, %42 : vector<1x8x8xf32>
    %cst_22 = arith.constant dense<0xFF800000> : vector<1x8xf32>
    %51 = vector.multi_reduction <maximumf>, %50, %cst_22 [2] : vector<1x8x8xf32> to vector<1x8xf32>
    %52 = vector.shape_cast %51 : vector<1x8xf32> to vector<1x8x1xf32>
    %53 = vector.broadcast %52 : vector<1x8x1xf32> to vector<1x8x8xf32>
    %54 = arith.subf %50, %53 : vector<1x8x8xf32>
    %55 = math.exp %54 : vector<1x8x8xf32>
    %cst_23 = arith.constant dense<0.000000e+00> : vector<1x8xf32>
    %56 = vector.multi_reduction <add>, %55, %cst_23 [2] : vector<1x8x8xf32> to vector<1x8xf32>
    %57 = vector.shape_cast %56 : vector<1x8xf32> to vector<1x8x1xf32>
    %58 = tpu.reciprocal %57 {approx = true} : vector<1x8x1xf32> -> vector<1x8x1xf32>
    %59 = vector.broadcast %58 : vector<1x8x1xf32> to vector<1x8x8xf32>
    %60 = arith.mulf %55, %59 : vector<1x8x8xf32>
    %61 = arith.truncf %60 : vector<1x8x8xf32> to vector<1x8x8xbf16>
    "tpu.trace_start"() <{level = 10 : i32, message = "bqk,bkd->bqd"}> : () -> ()
    %cst_24 = arith.constant dense<0.000000e+00> : vector<1x8x8xf32>
    %62 = tpu.matmul %61, %48, %cst_24 {dimension_numbers = #tpu.dot_dimension_numbers<[2], [1], [1], [2], [0, 0, 0, 1, 1, 2], [0], [0]>} : vector<1x8x8xbf16>, vector<1x8x8xbf16>, vector<1x8x8xf32> -> vector<1x8x8xf32>
    "tpu.trace_stop"() : () -> ()
    %63 = vector.extract_strided_slice %33 {offsets = [0, 0, 8], sizes = [1, 8, 8], strides = [1, 1, 1]} : vector<1x8x32xf32> to vector<1x8x8xf32>
    %64 = arith.truncf %63 : vector<1x8x8xf32> to vector<1x8x8xbf16>
    %65 = vector.extract_strided_slice %34 {offsets = [0, 0, 8], sizes = [1, 8, 8], strides = [1, 1, 1]} : vector<1x8x32xf32> to vector<1x8x8xf32>
    %66 = arith.truncf %65 : vector<1x8x8xf32> to vector<1x8x8xbf16>
    %67 = vector.extract_strided_slice %35 {offsets = [0, 0, 8], sizes = [1, 8, 8], strides = [1, 1, 1]} : vector<1x8x32xf32> to vector<1x8x8xf32>
    %68 = arith.truncf %67 : vector<1x8x8xf32> to vector<1x8x8xbf16>
    "tpu.trace_start"() <{level = 10 : i32, message = "bqd,bkd->bqk"}> : () -> ()
    %cst_25 = arith.constant dense<0.000000e+00> : vector<1x8x8xf32>
    %69 = tpu.matmul %64, %66, %cst_25 {dimension_numbers = #tpu.dot_dimension_numbers<[2], [2], [1], [1], [0, 0, 0, 1, 1, 1], [0], [0]>} : vector<1x8x8xbf16>, vector<1x8x8xbf16>, vector<1x8x8xf32> -> vector<1x8x8xf32>
    "tpu.trace_stop"() : () -> ()
    %70 = arith.addf %69, %42 : vector<1x8x8xf32>
    %cst_26 = arith.constant dense<0xFF800000> : vector<1x8xf32>
    %71 = vector.multi_reduction <maximumf>, %70, %cst_26 [2] : vector<1x8x8xf32> to vector<1x8xf32>
    %72 = vector.shape_cast %71 : vector<1x8xf32> to vector<1x8x1xf32>
    %73 = vector.broadcast %72 : vector<1x8x1xf32> to vector<1x8x8xf32>
    %74 = arith.subf %70, %73 : vector<1x8x8xf32>
    %75 = math.exp %74 : vector<1x8x8xf32>
    %cst_27 = arith.constant dense<0.000000e+00> : vector<1x8xf32>
    %76 = vector.multi_reduction <add>, %75, %cst_27 [2] : vector<1x8x8xf32> to vector<1x8xf32>
    %77 = vector.shape_cast %76 : vector<1x8xf32> to vector<1x8x1xf32>
    %78 = tpu.reciprocal %77 {approx = true} : vector<1x8x1xf32> -> vector<1x8x1xf32>
    %79 = vector.broadcast %78 : vector<1x8x1xf32> to vector<1x8x8xf32>
    %80 = arith.mulf %75, %79 : vector<1x8x8xf32>
    %81 = arith.truncf %80 : vector<1x8x8xf32> to vector<1x8x8xbf16>
    "tpu.trace_start"() <{level = 10 : i32, message = "bqk,bkd->bqd"}> : () -> ()
    %cst_28 = arith.constant dense<0.000000e+00> : vector<1x8x8xf32>
    %82 = tpu.matmul %81, %68, %cst_28 {dimension_numbers = #tpu.dot_dimension_numbers<[2], [1], [1], [2], [0, 0, 0, 1, 1, 2], [0], [0]>} : vector<1x8x8xbf16>, vector<1x8x8xbf16>, vector<1x8x8xf32> -> vector<1x8x8xf32>
    "tpu.trace_stop"() : () -> ()
    %83 = vector.extract_strided_slice %33 {offsets = [0, 0, 16], sizes = [1, 8, 8], strides = [1, 1, 1]} : vector<1x8x32xf32> to vector<1x8x8xf32>
    %84 = arith.truncf %83 : vector<1x8x8xf32> to vector<1x8x8xbf16>
    %85 = vector.extract_strided_slice %34 {offsets = [0, 0, 16], sizes = [1, 8, 8], strides = [1, 1, 1]} : vector<1x8x32xf32> to vector<1x8x8xf32>
    %86 = arith.truncf %85 : vector<1x8x8xf32> to vector<1x8x8xbf16>
    %87 = vector.extract_strided_slice %35 {offsets = [0, 0, 16], sizes = [1, 8, 8], strides = [1, 1, 1]} : vector<1x8x32xf32> to vector<1x8x8xf32>
    %88 = arith.truncf %87 : vector<1x8x8xf32> to vector<1x8x8xbf16>
    "tpu.trace_start"() <{level = 10 : i32, message = "bqd,bkd->bqk"}> : () -> ()
    %cst_29 = arith.constant dense<0.000000e+00> : vector<1x8x8xf32>
    %89 = tpu.matmul %84, %86, %cst_29 {dimension_numbers = #tpu.dot_dimension_numbers<[2], [2], [1], [1], [0, 0, 0, 1, 1, 1], [0], [0]>} : vector<1x8x8xbf16>, vector<1x8x8xbf16>, vector<1x8x8xf32> -> vector<1x8x8xf32>
    "tpu.trace_stop"() : () -> ()
    %90 = arith.addf %89, %42 : vector<1x8x8xf32>
    %cst_30 = arith.constant dense<0xFF800000> : vector<1x8xf32>
    %91 = vector.multi_reduction <maximumf>, %90, %cst_30 [2] : vector<1x8x8xf32> to vector<1x8xf32>
    %92 = vector.shape_cast %91 : vector<1x8xf32> to vector<1x8x1xf32>
    %93 = vector.broadcast %92 : vector<1x8x1xf32> to vector<1x8x8xf32>
    %94 = arith.subf %90, %93 : vector<1x8x8xf32>
    %95 = math.exp %94 : vector<1x8x8xf32>
    %cst_31 = arith.constant dense<0.000000e+00> : vector<1x8xf32>
    %96 = vector.multi_reduction <add>, %95, %cst_31 [2] : vector<1x8x8xf32> to vector<1x8xf32>
    %97 = vector.shape_cast %96 : vector<1x8xf32> to vector<1x8x1xf32>
    %98 = tpu.reciprocal %97 {approx = true} : vector<1x8x1xf32> -> vector<1x8x1xf32>
    %99 = vector.broadcast %98 : vector<1x8x1xf32> to vector<1x8x8xf32>
    %100 = arith.mulf %95, %99 : vector<1x8x8xf32>
    %101 = arith.truncf %100 : vector<1x8x8xf32> to vector<1x8x8xbf16>
    "tpu.trace_start"() <{level = 10 : i32, message = "bqk,bkd->bqd"}> : () -> ()
    %cst_32 = arith.constant dense<0.000000e+00> : vector<1x8x8xf32>
    %102 = tpu.matmul %101, %88, %cst_32 {dimension_numbers = #tpu.dot_dimension_numbers<[2], [1], [1], [2], [0, 0, 0, 1, 1, 2], [0], [0]>} : vector<1x8x8xbf16>, vector<1x8x8xbf16>, vector<1x8x8xf32> -> vector<1x8x8xf32>
    "tpu.trace_stop"() : () -> ()
    %103 = vector.extract_strided_slice %33 {offsets = [0, 0, 24], sizes = [1, 8, 8], strides = [1, 1, 1]} : vector<1x8x32xf32> to vector<1x8x8xf32>
    %104 = arith.truncf %103 : vector<1x8x8xf32> to vector<1x8x8xbf16>
    %105 = vector.extract_strided_slice %34 {offsets = [0, 0, 24], sizes = [1, 8, 8], strides = [1, 1, 1]} : vector<1x8x32xf32> to vector<1x8x8xf32>
    %106 = arith.truncf %105 : vector<1x8x8xf32> to vector<1x8x8xbf16>
    %107 = vector.extract_strided_slice %35 {offsets = [0, 0, 24], sizes = [1, 8, 8], strides = [1, 1, 1]} : vector<1x8x32xf32> to vector<1x8x8xf32>
    %108 = arith.truncf %107 : vector<1x8x8xf32> to vector<1x8x8xbf16>
    "tpu.trace_start"() <{level = 10 : i32, message = "bqd,bkd->bqk"}> : () -> ()
    %cst_33 = arith.constant dense<0.000000e+00> : vector<1x8x8xf32>
    %109 = tpu.matmul %104, %106, %cst_33 {dimension_numbers = #tpu.dot_dimension_numbers<[2], [2], [1], [1], [0, 0, 0, 1, 1, 1], [0], [0]>} : vector<1x8x8xbf16>, vector<1x8x8xbf16>, vector<1x8x8xf32> -> vector<1x8x8xf32>
    "tpu.trace_stop"() : () -> ()
    %110 = arith.addf %109, %42 : vector<1x8x8xf32>
    %cst_34 = arith.constant dense<0xFF800000> : vector<1x8xf32>
    %111 = vector.multi_reduction <maximumf>, %110, %cst_34 [2] : vector<1x8x8xf32> to vector<1x8xf32>
    %112 = vector.shape_cast %111 : vector<1x8xf32> to vector<1x8x1xf32>
    %113 = vector.broadcast %112 : vector<1x8x1xf32> to vector<1x8x8xf32>
    %114 = arith.subf %110, %113 : vector<1x8x8xf32>
    %115 = math.exp %114 : vector<1x8x8xf32>
    %cst_35 = arith.constant dense<0.000000e+00> : vector<1x8xf32>
    %116 = vector.multi_reduction <add>, %115, %cst_35 [2] : vector<1x8x8xf32> to vector<1x8xf32>
    %117 = vector.shape_cast %116 : vector<1x8xf32> to vector<1x8x1xf32>
    %118 = tpu.reciprocal %117 {approx = true} : vector<1x8x1xf32> -> vector<1x8x1xf32>
    %119 = vector.broadcast %118 : vector<1x8x1xf32> to vector<1x8x8xf32>
    %120 = arith.mulf %115, %119 : vector<1x8x8xf32>
    %121 = arith.truncf %120 : vector<1x8x8xf32> to vector<1x8x8xbf16>
    "tpu.trace_start"() <{level = 10 : i32, message = "bqk,bkd->bqd"}> : () -> ()
    %cst_36 = arith.constant dense<0.000000e+00> : vector<1x8x8xf32>
    %122 = tpu.matmul %121, %108, %cst_36 {dimension_numbers = #tpu.dot_dimension_numbers<[2], [1], [1], [2], [0, 0, 0, 1, 1, 2], [0], [0]>} : vector<1x8x8xbf16>, vector<1x8x8xbf16>, vector<1x8x8xf32> -> vector<1x8x8xf32>
    "tpu.trace_stop"() : () -> ()
    %123 = tpu.concatenate %62, %82, %102, %122 in 2 : vector<1x8x8xf32>, vector<1x8x8xf32>, vector<1x8x8xf32>, vector<1x8x8xf32> -> vector<1x8x32xf32>
    %124 = vector.shape_cast %123 : vector<1x8x32xf32> to vector<8x32xf32>
    %125 = arith.truncf %124 : vector<8x32xf32> to vector<8x32xbf16>
    %c0_37 = arith.constant 0 : index
    %c0_38 = arith.constant 0 : index
    %126 = vector.load %arg5[%c0_37, %c0_38] : memref<32x32xbf16, #tpu.memory_space<vmem>>, vector<32x32xbf16>
    %cst_39 = arith.constant dense<0.000000e+00> : vector<8x32xf32>
    %127 = tpu.matmul %125, %126, %cst_39 {dimension_numbers = #tpu.dot_dimension_numbers<[1], [0], [0], [1], [0, 0, 1, 1], [], []>} : vector<8x32xbf16>, vector<32x32xbf16>, vector<8x32xf32> -> vector<8x32xf32>
    %c0_40 = arith.constant 0 : index
    %c0_41 = arith.constant 0 : index
    %128 = vector.load %arg6[%c0_40, %c0_41] : memref<1x32xf32, #tpu.memory_space<vmem>>, vector<1x32xf32>
    %129 = vector.broadcast %128 : vector<1x32xf32> to vector<8x32xf32>
    %130 = arith.addf %127, %129 : vector<8x32xf32>
    %131 = arith.addf %1, %130 : vector<8x32xf32>
    %c0_42 = arith.constant 0 : index
    %c0_43 = arith.constant 0 : index
    %132 = vector.load %arg9[%c0_42, %c0_43] : memref<1x32xf32, #tpu.memory_space<vmem>>, vector<1x32xf32>
    %c0_44 = arith.constant 0 : index
    %c0_45 = arith.constant 0 : index
    %133 = vector.load %arg10[%c0_44, %c0_45] : memref<1x32xf32, #tpu.memory_space<vmem>>, vector<1x32xf32>
    %cst_46 = arith.constant dense<0.000000e+00> : vector<8xf32>
    %134 = vector.multi_reduction <add>, %131, %cst_46 [1] : vector<8x32xf32> to vector<8xf32>
    %135 = vector.shape_cast %134 : vector<8xf32> to vector<8x1xf32>
    %cst_47 = arith.constant 3.200000e+01 : f32
    %136 = vector.broadcast %cst_47 : f32 to vector<8x1xf32>
    %137 = arith.divf %135, %136 : vector<8x1xf32>
    %138 = vector.broadcast %137 : vector<8x1xf32> to vector<8x32xf32>
    %139 = arith.subf %131, %138 : vector<8x32xf32>
    %140 = arith.mulf %139, %139 : vector<8x32xf32>
    %cst_48 = arith.constant dense<0.000000e+00> : vector<8xf32>
    %141 = vector.multi_reduction <add>, %140, %cst_48 [1] : vector<8x32xf32> to vector<8xf32>
    %142 = vector.shape_cast %141 : vector<8xf32> to vector<8x1xf32>
    %cst_49 = arith.constant 3.200000e+01 : f32
    %143 = vector.broadcast %cst_49 : f32 to vector<8x1xf32>
    %144 = arith.divf %142, %143 : vector<8x1xf32>
    %145 = vector.broadcast %137 : vector<8x1xf32> to vector<8x32xf32>
    %146 = arith.subf %131, %145 : vector<8x32xf32>
    %cst_50 = arith.constant 9.99999974E-6 : f32
    %147 = vector.broadcast %cst_50 : f32 to vector<8x1xf32>
    %148 = arith.addf %144, %147 : vector<8x1xf32>
    %149 = math.rsqrt %148 : vector<8x1xf32>
    %150 = vector.broadcast %149 : vector<8x1xf32> to vector<8x32xf32>
    %151 = arith.mulf %146, %150 : vector<8x32xf32>
    %152 = vector.broadcast %132 : vector<1x32xf32> to vector<8x32xf32>
    %153 = arith.mulf %151, %152 : vector<8x32xf32>
    %154 = vector.broadcast %133 : vector<1x32xf32> to vector<8x32xf32>
    %155 = arith.addf %153, %154 : vector<8x32xf32>
    %156 = arith.truncf %155 : vector<8x32xf32> to vector<8x32xbf16>
    %c0_51 = arith.constant 0 : index
    %c0_52 = arith.constant 0 : index
    %157 = vector.load %arg11[%c0_51, %c0_52] : memref<32x64xbf16, #tpu.memory_space<vmem>>, vector<32x64xbf16>
    %cst_53 = arith.constant dense<0.000000e+00> : vector<8x64xf32>
    %158 = tpu.matmul %156, %157, %cst_53 {dimension_numbers = #tpu.dot_dimension_numbers<[1], [0], [0], [1], [0, 0, 1, 1], [], []>} : vector<8x32xbf16>, vector<32x64xbf16>, vector<8x64xf32> -> vector<8x64xf32>
    %c0_54 = arith.constant 0 : index
    %c0_55 = arith.constant 0 : index
    %159 = vector.load %arg12[%c0_54, %c0_55] : memref<1x64xf32, #tpu.memory_space<vmem>>, vector<1x64xf32>
    %160 = vector.broadcast %159 : vector<1x64xf32> to vector<8x64xf32>
    %161 = arith.addf %158, %160 : vector<8x64xf32>
    %cst_56 = arith.constant 0.000000e+00 : f32
    %162 = vector.broadcast %cst_56 : f32 to vector<8x64xf32>
    %163 = arith.maximumf %161, %162 : vector<8x64xf32>
    %164 = arith.truncf %163 : vector<8x64xf32> to vector<8x64xbf16>
    %c0_57 = arith.constant 0 : index
    %c0_58 = arith.constant 0 : index
    %165 = vector.load %arg13[%c0_57, %c0_58] : memref<64x32xbf16, #tpu.memory_space<vmem>>, vector<64x32xbf16>
    %cst_59 = arith.constant dense<0.000000e+00> : vector<8x32xf32>
    %166 = tpu.matmul %164, %165, %cst_59 {dimension_numbers = #tpu.dot_dimension_numbers<[1], [0], [0], [1], [0, 0, 1, 1], [], []>} : vector<8x64xbf16>, vector<64x32xbf16>, vector<8x32xf32> -> vector<8x32xf32>
    %c0_60 = arith.constant 0 : index
    %c0_61 = arith.constant 0 : index
    %167 = vector.load %arg14[%c0_60, %c0_61] : memref<1x32xf32, #tpu.memory_space<vmem>>, vector<1x32xf32>
    %168 = vector.broadcast %167 : vector<1x32xf32> to vector<8x32xf32>
    %169 = arith.addf %166, %168 : vector<8x32xf32>
    %170 = arith.addf %131, %169 : vector<8x32xf32>
    %171 = vector.shape_cast %170 : vector<8x32xf32> to vector<1x8x32xf32>
    %c0_62 = arith.constant 0 : index
    %c0_63 = arith.constant 0 : index
    %c0_64 = arith.constant 0 : index
    %172 = vector.load %arg15[%c0_62, %c0_63, %c0_64] : memref<1x8x32xf32, #tpu.memory_space<vmem>>, vector<1x8x32xf32>
    tpu.vector_store %arg15[%c0_62, %c0_63, %c0_64], %171 {strides = array<i32>} : memref<1x8x32xf32, #tpu.memory_space<vmem>>, vector<1x8x32xf32>,
    return
  }
  func.func @transform_0(%arg0: i32) -> (i32, i32, i32) {
    %c0_i32 = arith.constant 0 : i32
    %c0_i32_0 = arith.constant 0 : i32
    %c0_i32_1 = arith.constant 0 : i32
    return %arg0, %c0_i32, %c0_i32_0 : i32, i32, i32
  }
  func.func @transform_1(%arg0: i32) -> (i32, i32, i32) {
    %c0_i32 = arith.constant 0 : i32
    %c0_i32_0 = arith.constant 0 : i32
    %c0_i32_1 = arith.constant 0 : i32
    return %arg0, %c0_i32, %c0_i32_0 : i32, i32, i32
  }
  func.func @transform_2(%arg0: i32) -> (i32, i32) {
    %c0_i32 = arith.constant 0 : i32
    %c0_i32_0 = arith.constant 0 : i32
    %c0_i32_1 = arith.constant 0 : i32
    return %c0_i32, %c0_i32_0 : i32, i32
  }
  func.func @transform_3(%arg0: i32) -> (i32, i32) {
    %c0_i32 = arith.constant 0 : i32
    %c0_i32_0 = arith.constant 0 : i32
    %c0_i32_1 = arith.constant 0 : i32
    return %c0_i32, %c0_i32_0 : i32, i32
  }
  func.func @transform_4(%arg0: i32) -> (i32, i32) {
    %c0_i32 = arith.constant 0 : i32
    %c0_i32_0 = arith.constant 0 : i32
    %c0_i32_1 = arith.constant 0 : i32
    return %c0_i32, %c0_i32_0 : i32, i32
  }
  func.func @transform_5(%arg0: i32) -> (i32, i32) {
    %c0_i32 = arith.constant 0 : i32
    %c0_i32_0 = arith.constant 0 : i32
    %c0_i32_1 = arith.constant 0 : i32
    return %c0_i32, %c0_i32_0 : i32, i32
  }
  func.func @transform_6(%arg0: i32) -> (i32, i32) {
    %c0_i32 = arith.constant 0 : i32
    %c0_i32_0 = arith.constant 0 : i32
    %c0_i32_1 = arith.constant 0 : i32
    return %c0_i32, %c0_i32_0 : i32, i32
  }
  func.func @transform_7(%arg0: i32) -> (i32, i32) {
    %c0_i32 = arith.constant 0 : i32
    %c0_i32_0 = arith.constant 0 : i32
    %c0_i32_1 = arith.constant 0 : i32
    return %c0_i32, %c0_i32_0 : i32, i32
  }
  func.func @transform_8(%arg0: i32) -> (i32, i32) {
    %c0_i32 = arith.constant 0 : i32
    %c0_i32_0 = arith.constant 0 : i32
    %c0_i32_1 = arith.constant 0 : i32
    return %c0_i32, %c0_i32_0 : i32, i32
  }
  func.func @transform_9(%arg0: i32) -> (i32, i32) {
    %c0_i32 = arith.constant 0 : i32
    %c0_i32_0 = arith.constant 0 : i32
    %c0_i32_1 = arith.constant 0 : i32
    return %c0_i32, %c0_i32_0 : i32, i32
  }
  func.func @transform_10(%arg0: i32) -> (i32, i32) {
    %c0_i32 = arith.constant 0 : i32
    %c0_i32_0 = arith.constant 0 : i32
    %c0_i32_1 = arith.constant 0 : i32
    return %c0_i32, %c0_i32_0 : i32, i32
  }
  func.func @transform_11(%arg0: i32) -> (i32, i32) {
    %c0_i32 = arith.constant 0 : i32
    %c0_i32_0 = arith.constant 0 : i32
    %c0_i32_1 = arith.constant 0 : i32
    return %c0_i32, %c0_i32_0 : i32, i32
  }
  func.func @transform_12(%arg0: i32) -> (i32, i32) {
    %c0_i32 = arith.constant 0 : i32
    %c0_i32_0 = arith.constant 0 : i32
    %c0_i32_1 = arith.constant 0 : i32
    return %c0_i32, %c0_i32_0 : i32, i32
  }
  func.func @transform_13(%arg0: i32) -> (i32, i32) {
    %c0_i32 = arith.constant 0 : i32
    %c0_i32_0 = arith.constant 0 : i32
    %c0_i32_1 = arith.constant 0 : i32
    return %c0_i32, %c0_i32_0 : i32, i32
  }
  func.func @transform_14(%arg0: i32) -> (i32, i32, i32) {
    %c0_i32 = arith.constant 0 : i32
    %c0_i32_0 = arith.constant 0 : i32
    %c0_i32_1 = arith.constant 0 : i32
    return %arg0, %c0_i32, %c0_i32_0 : i32, i32, i32
  }
}

</mosaic_0001>

<bundles_post_ra>
// kernel: tpu_custom_call.1
= control target key start
LH: loop header
LB: loop body
LE: loop exit
PB: predicated region body
PF: predicated region fallthrough
CT: control target
= control target key end

     0   :  { %s1778_s0 = inlined_call_operand.vmem [shape: f32[2,8,32], index: 0, kind: input, shape index: {}]   ;;  %s1779_s1 = inlined_call_operand.hbm [shape: s8[2,8,8], index: 1, kind: input, shape index: {}]   ;;  %s1780_s2 = inlined_call_operand.vmem [shape: bf16[32,96], index: 2, kind: input, shape index: {}]   ;;  %s1781_s3 = inlined_call_operand.vmem [shape: f32[1,96], index: 3, kind: input, shape index: {}]   ;;  %s1782_s4 = inlined_call_operand.vmem [shape: bf16[32,32], index: 4, kind: input, shape index: {}]   ;;  %s1783_s5 = inlined_call_operand.vmem [shape: f32[1,32], index: 5, kind: input, shape index: {}]   ;;  %s1784_s6 = inlined_call_operand.vmem [shape: f32[1,32], index: 6, kind: input, shape index: {}]   ;;  %s1785_s7 = inlined_call_operand.vmem [shape: f32[1,32], index: 7, kind: input, shape index: {}]   ;;  %s1786_s8 = inlined_call_operand.vmem [shape: f32[1,32], index: 8, kind: input, shape index: {}]   ;;  %s1787_s9 = inlined_call_operand.vmem [shape: f32[1,32], index: 9, kind: input, shape index: {}]   ;;  %s1788_s10 = inlined_call_operand.hbm [shape: bf16[32,64], index: 10, kind: input, shape index: {}]   ;;  %s1789_s11 = inlined_call_operand.vmem [shape: f32[1,64], index: 11, kind: input, shape index: {}]   ;;  %s1790_s12 = inlined_call_operand.vmem [shape: bf16[64,32], index: 12, kind: input, shape index: {}]   ;;  %s1791_s13 = inlined_call_operand.vmem [shape: f32[1,32], index: 13, kind: input, shape index: {}]   ;;  %s1792_s14 = inlined_call_operand.hbm [shape: f32[2,8,32], index: 14, kind: output, shape index: {}]  }
   0x1   :  { %1801 = sst [smem:[#allocation17_spill]] %s1788_s10 }
   0x2   :  { %1802 = sst [smem:[#allocation18_spill]] %s1792_s14 }
   0x3   :  { %19 = vsyncpa [#allocation3], 0 }
   0x4   :  { %21 = vsyncpa [#allocation3 + $0x1], 0 }
   0x5   :  { %22 = vsyncpa [#allocation6], 0 }
   0x6   :  { %23 = vsyncpa [#allocation4], 0 }
   0x7   :  { %25 = vsyncpa [#allocation4 + $0x1], 0  ;;  %s1528_s29 = smov 0   ;;  %s1530_s30 = smov 0  }
   0x8   :  { %s1532_s15 = smov 0   ;;  %s1534_s16 = smov 0  }
   0x9 LB: > { %1803 = sst [smem:[#allocation11_spill]] %s1420_s29  ;;  %s1552_s20 = sadd.s32 4294967295, %s1432_s16   ;;  %s1432_s16 = sphi %s1534_s16, %s1820_s16   ;;  %s1428_s15 = sphi %s1532_s15, %s1822_s15   ;;  %s1424_s30 = sphi %s1530_s30, %s1824_s30   ;;  %s1420_s29 = sphi %s1528_s29, %s1823_s29  }
   0xa   : > { %1804 = sst [smem:[#allocation12_spill]] %s1428_s15  ;;  %p1121_p0 = scmp.ge.s32.totalorder %s1432_s16, 1 }
   0xb   : > { %s1805_s10 = sld [smem:[#allocation17_spill]]  ;;  %p78_p1 = scmp.eq.s32.totalorder %s1552_s20, 0 }
   0xc   : > { %p366_p2 = scmp.lt.s32.totalorder %s1432_s16, 3  ;;  %s1434_s22 = smov [#allocation5]  }
   0xd   : > { %s403_s23 = sshll.u32 %s1434_s22, 4  ;;  %s1435_s24 = smov 64   ;;  %s404_s23 = int_to_ptr.vmem [resolvable:$true] %s403_s23 }
   0xe   : > { %p1557_p3 = pnand %p1121_p0, %p366_p2  ;;  %s1436_s25 = smov 4  }
   0xf   : > { %s1120_s26 = sadd.s32 4294967294, %s1432_s16   ;;  %s1568_s27 = sadd.s32 1, %s1432_s16  }
  0x10   : > { %p1205_p4 = pneg %p1557_p3  ;;  %1807 = sst [smem:[#allocation13_spill]] %s1568_s27 }
  0x11   : > { %s401_s19 = sshll.u32 %s1805_s10, 4  ;;  %s64_s28 = sadd.s32 1, %s1428_s15  ;;  %s402_s19 = int_to_ptr.hbm [resolvable:$true] %s401_s19 }
  0x12   : > { %p1206_p6 = pnand %p1205_p4, %p78_p1  ;;  %s61_s17 = ssub.s32 %s1432_s16, %s1568_s27 }
  0x13   : > { %p71_p7 = scmp.ne.s32.totalorder %s1428_s15, %s1424_s30  ;;  %p62_p8 = scmp.eq.s32.totalorder %s61_s17, 0 }
  0x14   : > { %1208 = dma.hbm_to_vmem [thread:$0]  (!%p1206_p6), %s402_s19, 256, %s404_s23, [#allocation6], %s1435_s24, %s1435_s24, %s1436_s25  }
  0x15   : > { %p72_p9 = scmp.eq.s32.totalorder %s1432_s16, 0  ;;  %p77_p10 = scmp.ne.s32.totalorder %s1424_s30, %s1420_s29 }
  0x16   : > { %p353_p11 = scmp.eq.s32.totalorder %s1552_s20, 1  ;;  %p359_p0 = scmp.eq.s32.totalorder %s1120_s26, 1 }
  0x17   : > { %s1580_s18 = scalar_select %p62_p8, %s1428_s15, %s64_s28  }
  0x18   : > { %p1584_p12 = por %p78_p1, %p77_p10  ;;  %p1588_p13 = por %p353_p11, %p71_p7 }
  0x19   : > { %1808 = sst [smem:[#allocation14_spill]] %s1580_s18  ;;  %p73_p2 = por %p72_p9, %p71_p7 }
  0x1a   : > { %s1810_s19 = scalar_select %p1588_p13, 1, 0 }
  0x1b   : > { %s433_s23 = sand.u32 1, %s1428_s15   ;;  %p1593_p4 = por %p359_p0, %p77_p10 }
  0x1c   : > { %1811 = sst [smem:[#allocation15_spill]] %s1810_s19  ;;  %p1218_p6 = scmp.lt.s32.totalorder %s1432_s16, 2 }
  0x1d   : > { %s1812_s24 = scalar_select %p1593_p4, 1, 0 }
  0x1e   : > { %s1124_s25 = sshll.u32 %s433_s23, 1  ;;  %s1125_s28 = sshll.u32 %s1432_s16, 1 }
  0x1f   : > { %1813 = sst [smem:[#allocation16_spill]] %s1812_s24  ;;  %s441_s18 = scalar_lea.hbm %s1779_s1, %s1125_s28 }
  0x20   : > { %s443_s27 = sshll.u32 %s441_s18, 4  ;;  %s437_s29 = scalar_lea.vmem [#allocation2], %s1124_s25  ;;  %s444_s27 = int_to_ptr.hbm [resolvable:$true] %s443_s27 }
  0x21   : > { %s445_s14 = sshll.u32 %s437_s29, 4  ;;  %p1602_p8 = pnand %p1218_p6, %p73_p2  ;;  %s446_s14 = int_to_ptr.vmem [resolvable:$true] %s445_s14 }
  0x22   : > { %s434_s15 = scalar_lea.sflag [#allocation3], %s433_s23  ;;  %s1332_s19 = sshra.s32 %s444_s27, 4  ;;  %s1333_s19 = int_to_ptr.hbm [resolvable:$true] %s1332_s19 }
  0x23   : > { %s1334_s24 = scalar_lea.hbm %s1333_s19, 2  ;;  %p1336_p9 = pneg %p1602_p8 }
  0x24   : > { %p1335_p7 = scmp.ne.s32.totalorder %s1333_s19, %s1334_s24  ;;  %s1339_s29 = scalar_lea.hbm %s1779_s1, 4 }
  0x25   : > { %p1340_p0 = scmp.lt.s32.totalorder %s1333_s19, %s1779_s1  ;;  %p1341_p2 = scmp.lt.s32.totalorder %s1339_s29, %s1334_s24 }
  0x26   : > { %p1337_p10 = pnand %p1336_p9, %p1335_p7 }
  0x27   : > { %p1342_p6 = por %p1341_p2, %p1340_p0 }
  0x28   : > { %p1338_p11 = pneg %p1337_p10 }
  0x2a   : > { %p1343_p5 = pnand %p1342_p6, %p1338_p11 }
  0x2c   : > { %1346 = shalt.err (!%p1343_p5)
}
  0x2d   : > { %1212 = dma.hbm_to_vmem [thread:$0]  (!%p1602_p8), %s444_s27, 32, %s446_s14, %s434_s15  }
  0x2e   : > { %454 = sbr.rel (%p1557_p3) target bundleno = 1927 (0x787), region = 76  ;;  %s1619_s23 = sand.u32 (!%p1557_p3), 1, %s1424_s30  }
  0x2f   : > { %s1127_s17 = sshll.u32 (!%p1557_p3), %s1619_s23, 1  ;;  %s457_s10 = scalar_lea.sflag (!%p1557_p3), [#allocation3], %s1619_s23 }
  0x30   : > { %s1623_s18 = scalar_lea.vmem (!%p1557_p3), [#allocation2], %s1127_s17 }
  0x33   : > { %1407 = dma.done.wait (%p1584_p12), %s457_s10, 32  }
  0x34   : > { %1409 = vsyncadd (%p1584_p12), %s457_s10, 4294967264 }
  0x35   : > { %1411 = dma.done.wait (%p78_p1), [#allocation6], 256  }
  0x36   : > { %1413 = vsyncadd (%p78_p1), [#allocation6], 4294967040  ;;  %p515_p3 = scmp.lt.s32.totalorder %s1552_s20, 1  ;;  %vm523_vm0 = vcmask 261120   ;;  %v1437_v2 = vmov 32.0   ;;  %v1188_v14 = vld [vmem:[%s1780_s2 + $0x8] sm:$0xff] }
  0x37   : > { %1280 = vrcp.f32 %v1437_v2  ;;  %591 = vmatpush.bf16.msra.mxu0 %v1188_v14  ;;  %v1187_v15 = vld [vmem:[%s1780_s2] sm:$0xff]  ;;  %s1438_s21 = smov 104   ;;  %s1439_s27 = smov 120   ;;  %vm609_vm5 = vcmask 64512   ;;  %v1445_v53 = vmov 0.0   ;;  %vm646_vm7 = vcmask 1043456  }
  0x38   : > { %s516_s14 = scalar_select %p515_p3, %s1552_s20, 1  ;;  %v1272_v25 = vld [vmem:[%s1784_s6] ss:$0 sm:$0xff]  ;;  %vm844_vm8 = vcmask 130048   ;;  %vm846_vm9 = vcmask 195584   ;;  %vm993_vm13 = vcmask 523264  }
  0x39   : > { %v1273_v28 = vld [vmem:[%s1785_s7] ss:$0 sm:$0xff]  ;;  %s1441_s22 = smov 72   ;;  %s1442_s24 = smov 88  }
  0x3a   : > { %s1130_s15 = sshll.u32 %s516_s14, 3  ;;  %v1274_v32 = vld [vmem:[%s1781_s3] ss:$0 sm:$0xff]  ;;  %s1443_s26 = smov 112  }
  0x3b   : > { %s518_s19 = scalar_lea.vmem %s1778_s0, %s1130_s15  ;;  %592 = vmatpush.bf16.msra.mxu0 %v1187_v15  ;;  %s1444_s29 = smov 80   ;;  %v598_v50 = vld [vmem:[%s1623_s18] sm:$0x3] }
  0x3c   : > { %v1638_v0 = vld [vmem:[%s518_s19] sm:$0xff]  ;;  %s1440_s19 = smov 96   ;;  %v599_v51 = vunpack.c.0.s8 %v598_v50  ;;  %s1446_s18 = smov 64  }
  0x3d   : > { %v524_v1 = vsel %vm523_vm0, %v1638_v0, 0.0  ;;  %v1281_v3 = vpop.eup %1280  ;;  %s1447_s25 = smov 56   ;;  %s1448_s28 = smov 40  }
  0x3e   : > { %525 = vadd.xlane.f32.xlu0 %v524_v1  ;;  %v528_v4 = vmul.f32 32.0, %v1281_v3  ;;  %vm532_vm1 = vweird.f32 %v1281_v3  ;;  %v600_v52 = vcvt.s32.f32 %v599_v51  ;;  %s1449_s17 = smov 48   ;;  %s1450_s10 = smov 8  }
  0x3f   : > { %s1451_s14 = smov 24   ;;  %s1452_s15 = smov 16  }
  0x40   : > { %v529_v5 = vsub.f32 1.0, %v528_v4  ;;  %vm601_vm6 = vcmp.eq.f32.partialorder %v600_v52, 0.0 }
  0x41   : > { %v602_v54 = vsel %vm601_vm6, -1e+09, %v1445_v53 }
  0x42   : > { %v530_v6 = vmul.f32 %v1281_v3, %v529_v5 }
  0x44   : > { %v531_v7 = vadd.f32 %v1281_v3, %v530_v6 }
  0x46   : > { %v1642_v8 = vsel %vm532_vm1, %v1281_v3, %v531_v7 }
  0xb1   : > { %v526_v9 = vpop.xlane.xlu0 %525 }
  0xb2   : > { %v534_v10 = vmul.f32 %v1642_v8, %v526_v9 }
  0xb4   : > { %v535_v11 = vsub.f32 %v1638_v0, %v534_v10 }
  0xb6   : > { %v536_v12 = vmul.f32 %v535_v11, %v535_v11 }
  0xb8   : > { %v537_v13 = vsel %vm523_vm0, %v536_v12, 0.0 }
  0xb9   : > { %538 = vadd.xlane.f32.xlu0 %v537_v13 }
 0x12c   : > { %v539_v16 = vpop.xlane.xlu0 %538 }
 0x12d   : > { %v540_v17 = vmul.f32 %v539_v16, %v1642_v8 }
 0x12f   : > { %v541_v18 = vadd.f32 1e-05, %v540_v17 }
 0x131   : > { %1282 = vrsqrt.f32 %v541_v18  ;;  %vm548_vm3 = vweird.f32 %v541_v18 }
 0x137   : > { %v1283_v19 = vpop.eup %1282 }
 0x138   : > { %v543_v20 = vmul.f32 %v1283_v19, %v541_v18  ;;  %vm549_vm2 = vweird.f32 %v1283_v19 }
 0x139   : > { %vm550_vm4 = vmor %vm548_vm3, %vm549_vm2 }
 0x13a   : > { %v544_v21 = vmul.f32 %v1283_v19, %v543_v20 }
 0x13c   : > { %v545_v22 = vmul.f32 0.5, %v544_v21 }
 0x13e   : > { %v546_v23 = vsub.f32 1.5, %v545_v22 }
 0x140   : > { %v547_v24 = vmul.f32 %v1283_v19, %v546_v23 }
 0x142   : > { %v551_v26 = vsel %vm550_vm4, %v1283_v19, %v547_v24 }
 0x143   : > { %v552_v27 = vmul.f32 %v551_v26, %v535_v11 }
 0x145   : > { %v556_v29 = vmul.f32 %v1272_v25, %v552_v27 }
 0x147   : > { %v560_v30 = vadd.f32 %v1273_v28, %v556_v29 }
 0x149   : > { %v561_v31 = vpack.c.bf16 %v560_v30, %v560_v30 }
 0x14b   : > { %1139 = vmatmul.msk.bf16.vlgmr.msra.gmra.mxu0 %vm523_vm0, %v561_v31 }
 0x1c8   : > { %v594_v33 = vpop.f32.mrf.mxu0 }
 0x1c9   : > { %v595_v34 = vadd.f32 %v1274_v32, %v594_v33 }
 0x1cb   : > { %v603_v35 = vpack.c.bf16 %v595_v34, %v595_v34 }
 0x1cd   : > { %v605_v36 = vunpack.c.l.b16 %v603_v35 }
 0x1cf   : > { %v1664_v37 = vpack.c.b16 %v605_v36, %v605_v36 }
 0x1d0   : > { %v596_v38 = vpop.f32.mrf.mxu0 }
 0x1d1   : > { %775 = vrot.lane.b32.xlu0 %v1664_v37, %s1438_s21  ;;  %663 = vrot.lane.b32.xlu2 %v1664_v37, %s1439_s27 }
 0x1d2   : > { %607 = vrot.lane.b32.xlu1 %v1664_v37, %s1440_s19 }
 0x1d9   : > { %777 = vrot.lane.b32.xlu2 %v1664_v37, %s1441_s22 }
 0x1da   : > { %665 = vrot.lane.b32.xlu1 %v1664_v37, %s1442_s24 }
 0x1e1   : > { %719 = vrot.lane.b32.xlu2 %v1664_v37, %s1443_s26 }
 0x1e2   : > { %721 = vrot.lane.b32.xlu1 %v1664_v37, %s1444_s29  ;;  %s1129_s29 = sshll.u32 %s1619_s23, 3 }
 0x1e3   : > { %s514_s27 = scalar_lea.vmem [#allocation7], %s1129_s29 }
 0x1e4   : > { %s1025_s19 = sshll.u32 %s514_s27, 4  ;;  %s1026_s19 = int_to_ptr.vmem [resolvable:$true] %s1025_s19 }
 0x22b   : > { %v664_v39 = vpop.permute.xlu2 %663 }
 0x233   : > { %v778_v42 = vpop.permute.xlu2 %777 }
 0x234   : > { %v783_v45 = vsel %vm609_vm5, %v778_v42, 0 }
 0x23b   : > { %v720_v48 = vpop.permute.xlu2 %719 }
 0x243   : > { %v776_v49 = vpop.permute.xlu0 %775 }
 0x244   : > { %v608_v40 = vpop.permute.xlu1 %607 }
 0x245   : > { %v614_v41 = vsel %vm609_vm5, %v608_v40, 0 }
 0x246   : > { %623 = vmatpush.bf16.xpose.msra.mxu1 %v614_v41 }
 0x24c   : > { %v666_v43 = vpop.permute.xlu1 %665 }
 0x24d   : > { %1140 = vmatmul.msk.bf16.vlgmr.msra.gmra.mxu1 %vm609_vm5, %v603_v35  ;;  %v671_v44 = vsel %vm609_vm5, %v666_v43, 0 }
 0x24e   : > { %680 = vmatpush.bf16.xpose.msra.mxu3 %v671_v44 }
 0x254   : > { %v722_v46 = vpop.permute.xlu1 %721 }
 0x255   : > { %1142 = vmatmul.msk.bf16.vlgmr.msra.gmra.mxu3 %vm609_vm5, %v664_v39  ;;  %v727_v47 = vsel %vm609_vm5, %v722_v46, 0 }
 0x256   : > { %792 = vmatpush.bf16.xpose.msrb.mxu3 %v783_v45  ;;  %736 = vmatpush.bf16.xpose.msrb.mxu0 %v727_v47 }
 0x25d   : > { %1144 = vmatmul.msk.bf16.vlgmr.msrb.gmra.mxu0 %vm609_vm5, %v720_v48 }
 0x265   : > { %1146 = vmatmul.msk.bf16.vlgmr.msrb.gmra.mxu3 %vm609_vm5, %v776_v49 }
 0x2ca   : > { %v625_v55 = vpop.f32.mrf.mxu1 }
 0x2cb   : > { %v626_v56 = vadd.f32 %v625_v55, %v602_v54 }
 0x2cd   : > { %v629_v57 = vsel %vm609_vm5, %v626_v56, -inf }
 0x2ce   : > { %630 = vmax.xlane.f32.xlu1 %v629_v57 }
 0x2d2   : > { %v627_v58 = vpop.f32.mrf.mxu1 }
 0x2d8   : > { %v682_v59 = vpop.f32.mrf.mxu3 }
 0x2d9   : > { %v683_v60 = vadd.f32 %v682_v59, %v602_v54 }
 0x2da   : > { %v738_v61 = vpop.f32.mrf.mxu0 }
 0x2db   : > { %v686_v62 = vsel %vm609_vm5, %v683_v60, -inf  ;;  %v739_v63 = vadd.f32 %v738_v61, %v602_v54  ;;  %v1190_v61 = vld [vmem:[%s1782_s4 + $0x8] sm:$0xff] }
 0x2dc   : > { %687 = vmax.xlane.f32.xlu2 %v686_v62  ;;  %878 = vmatpush.bf16.msra.mxu0 %v1190_v61  ;;  %v1189_v62 = vld [vmem:[%s1782_s4] sm:$0xff] }
 0x2dd   : > { %v742_v3 = vsel %vm609_vm5, %v739_v63, -inf }
 0x2e0   : > { %v684_v1 = vpop.f32.mrf.mxu3  ;;  %879 = vmatpush.bf16.msra.mxu0 %v1189_v62 }
 0x2e2   : > { %v740_v2 = vpop.f32.mrf.mxu0 }
 0x2e4   : > { %743 = vmax.xlane.f32.xlu2 %v742_v3 }
 0x2e8   : > { %v794_v4 = vpop.f32.mrf.mxu3 }
 0x2e9   : > { %v795_v5 = vadd.f32 %v794_v4, %v602_v54 }
 0x2eb   : > { %v798_v6 = vsel %vm609_vm5, %v795_v5, -inf }
 0x2ec   : > { %799 = vmax.xlane.f32.xlu0 %v798_v6 }
 0x2f0   : > { %v796_v7 = vpop.f32.mrf.mxu3 }
 0x2f1   : > { %v1275_v7 = vld [vmem:[%s1783_s5] ss:$0 sm:$0xff] }
 0x2fc   : > { %641 = vrot.lane.b32.xlu2 %v1664_v37, %s1446_s18  ;;  %s1184_s18 = sshll.u32 %s1552_s20, 3  ;;  %s1013_s20 = scalar_lea.sflag [#allocation4], %s1619_s23 }
 0x300   : > { %698 = vrot.lane.b32.xlu0 %v1664_v37, %s1447_s25 }
 0x304   : > { %810 = vrot.lane.b32.xlu2 %v1664_v37, %s1448_s28 }
 0x308   : > { %754 = vrot.lane.b32.xlu0 %v1664_v37, %s1449_s17 }
 0x341   : > { %v631_v9 = vpop.xlane.xlu1 %630 }
 0x342   : > { %v632_v10 = vsub.f32 %v626_v56, %v631_v9 }
 0x344   : > { %v633_v11 = vmul.f32 1.442695, %v632_v10 }
 0x346   : > { %1284 = vpow2.f32 %v633_v11 }
 0x34c   : > { %v1285_v12 = vpop.eup %1284 }
 0x34d   : > { %v635_v13 = vsel %vm609_vm5, %v1285_v12, 0.0 }
 0x34e   : > { %636 = vadd.xlane.f32.xlu1 %v635_v13 }
 0x34f   : > { %v688_v14 = vpop.xlane.xlu2 %687 }
 0x350   : > { %v689_v15 = vsub.f32 %v683_v60, %v688_v14 }
 0x352   : > { %v690_v16 = vmul.f32 1.442695, %v689_v15 }
 0x354   : > { %1286 = vpow2.f32 %v690_v16 }
 0x357   : > { %v744_v17 = vpop.xlane.xlu2 %743 }
 0x358   : > { %v745_v24 = vsub.f32 %v739_v63, %v744_v17 }
 0x35a   : > { %v1287_v18 = vpop.eup %1286  ;;  %v746_v26 = vmul.f32 1.442695, %v745_v24 }
 0x35b   : > { %v692_v19 = vsel %vm609_vm5, %v1287_v18, 0.0 }
 0x35c   : > { %693 = vadd.xlane.f32.xlu1 %v692_v19  ;;  %v1192_v19 = vld [vmem:[#allocation5 + $0x8] sm:$0xff] }
 0x35f   : > { %v800_v20 = vpop.xlane.xlu0 %799  ;;  %v642_v21 = vpop.permute.xlu2 %641 }
 0x360   : > { %v801_v22 = vsub.f32 %v795_v5, %v800_v20  ;;  %v648_v23 = vsel %vm646_vm7, %v642_v21, 0  ;;  %v1191_v20 = vld [vmem:[#allocation5] sm:$0xff] }
 0x361   : > { %657 = vmatpush.bf16.msra.mxu2 %v648_v23  ;;  %v1195_v23 = vld [vmem:[%s1790_s12 + $0x10] sm:$0xff] }
 0x362   : > { %v802_v25 = vmul.f32 1.442695, %v801_v22 }
 0x364   : > { %1288 = vpow2.f32 %v802_v25  ;;  %v1194_v25 = vld [vmem:[%s1790_s12 + $0x8] sm:$0xff] }
 0x365   : > { %1290 = vpow2.f32 %v746_v26 }
 0x367   : > { %v811_v38 = vpop.permute.xlu2 %810 }
 0x368   : > { %v816_v40 = vsel %vm646_vm7, %v811_v38, 0  ;;  %v1193_v38 = vld [vmem:[%s1790_s12] sm:$0xff] }
 0x36a   : > { %v1289_v27 = vpop.eup %1288 }
 0x36b   : > { %v804_v28 = vsel %vm609_vm5, %v1289_v27, 0.0  ;;  %v1291_v29 = vpop.eup %1290 }
 0x36c   : > { %805 = vadd.xlane.f32.xlu1 %v804_v28  ;;  %v748_v32 = vsel %vm609_vm5, %v1291_v29, 0.0 }
 0x372   : > { %v699_v30 = vpop.permute.xlu0 %698 }
 0x373   : > { %v704_v31 = vsel %vm646_vm7, %v699_v30, 0 }
 0x374   : > { %713 = vmatpush.bf16.msrb.mxu2 %v704_v31  ;;  %749 = vadd.xlane.f32.xlu1 %v748_v32  ;;  %v1276_v31 = vld [vmem:[%s1786_s8] ss:$0 sm:$0xff] }
 0x37a   : > { %v755_v33 = vpop.permute.xlu0 %754 }
 0x37b   : > { %v760_v34 = vsel %vm646_vm7, %v755_v33, 0 }
 0x37c   : > { %769 = vmatpush.bf16.msrb.mxu1 %v760_v34  ;;  %v1277_v34 = vld [vmem:[%s1787_s9] ss:$0 sm:$0xff] }
 0x380   : > { %948 = vmatpush.bf16.msra.mxu1 %v1192_v19 }
 0x384   : > { %949 = vmatpush.bf16.msra.mxu1 %v1191_v20 }
 0x3c1   : > { %v637_v35 = vpop.xlane.xlu1 %636 }
 0x3c2   : > { %1292 = vrcp.f32 %v637_v35 }
 0x3c8   : > { %v1293_v36 = vpop.eup %1292 }
 0x3c9   : > { %v639_v37 = vmul.f32 %v1293_v36, %v1285_v12 }
 0x3cb   : > { %v640_v39 = vpack.c.bf16 %v639_v37, %v639_v37 }
 0x3cd   : > { %1141 = vmatmul.msk.bf16.vlgmr.msra.gmra.mxu2 %vm609_vm5, %v640_v39  ;;  %v1278_v39 = vld [vmem:[%s1789_s11] ss:$0 sm:$0xff] }
 0x3ce   : > { %825 = vmatpush.bf16.msra.mxu2 %v816_v40 }
 0x3cf   : > { %v694_v41 = vpop.xlane.xlu1 %693 }
 0x3d0   : > { %1294 = vrcp.f32 %v694_v41 }
 0x3d6   : > { %v1295_v42 = vpop.eup %1294 }
 0x3d7   : > { %v696_v43 = vmul.f32 %v1295_v42, %v1287_v18 }
 0x3d9   : > { %v697_v44 = vpack.c.bf16 %v696_v43, %v696_v43 }
 0x3dd   : > { %1143 = vmatmul.msk.bf16.vlgmr.msrb.gmra.mxu2 %vm609_vm5, %v697_v44 }
 0x3df   : > { %v806_v45 = vpop.xlane.xlu1 %805 }
 0x3e0   : > { %1296 = vrcp.f32 %v806_v45  ;;  %v1279_v45 = vld [vmem:[%s1791_s13] ss:$0 sm:$0xff] }
 0x3e6   : > { %v1297_v46 = vpop.eup %1296 }
 0x3e7   : > { %v808_v47 = vmul.f32 %v1297_v46, %v1289_v27  ;;  %v750_v48 = vpop.xlane.xlu1 %749 }
 0x3e8   : > { %1298 = vrcp.f32 %v750_v48 }
 0x3e9   : > { %v809_v49 = vpack.c.bf16 %v808_v47, %v808_v47 }
 0x3ed   : > { %1147 = vmatmul.msk.bf16.vlgmr.msra.gmra.mxu2 %vm609_vm5, %v809_v49 }
 0x3ee   : > { %v1299_v50 = vpop.eup %1298 }
 0x3ef   : > { %v752_v51 = vmul.f32 %v1299_v50, %v1291_v29 }
 0x3f1   : > { %v753_v52 = vpack.c.bf16 %v752_v51, %v752_v51 }
 0x3f3   : > { %1145 = vmatmul.msk.bf16.vlgmr.msrb.gmra.mxu1 %vm609_vm5, %v753_v52 }
 0x450   : > { %v659_v53 = vpop.f32.mrf.mxu2 }
 0x458   : > { %v661_v54 = vpop.f32.mrf.mxu2 }
 0x460   : > { %v715_v55 = vpop.f32.mrf.mxu2 }
 0x461   : > { %832 = vrot.lane.b32.xlu1 %v715_v55, %s1450_s10 }
 0x468   : > { %v717_v56 = vpop.f32.mrf.mxu2 }
 0x470   : > { %v771_v57 = vpop.f32.mrf.mxu1  ;;  %v827_v58 = vpop.f32.mrf.mxu2 }
 0x471   : > { %840 = vrot.lane.b32.xlu0 %v827_v58, %s1451_s14  ;;  %836 = vrot.lane.b32.xlu2 %v771_v57, %s1452_s15  ;;  %s1815_s14 = sld [smem:[#allocation18_spill]] }
 0x477   : > { %s1023_s21 = scalar_lea.hbm %s1815_s14, %s1184_s18  ;;  %s1382_s29 = scalar_lea.hbm %s1815_s14, 16 }
 0x478   : > { %v773_v59 = vpop.f32.mrf.mxu1  ;;  %v829_v60 = vpop.f32.mrf.mxu2  ;;  %s1027_s22 = sshll.u32 %s1023_s21, 4  ;;  %s1028_s22 = int_to_ptr.hbm [resolvable:$true] %s1027_s22 }
 0x479   : > { %s1376_s24 = sshra.s32 %s1028_s22, 4  ;;  %s1377_s24 = int_to_ptr.hbm [resolvable:$true] %s1376_s24 }
 0x47a   : > { %s1378_s26 = scalar_lea.hbm %s1377_s24, 8  ;;  %p1383_p8 = scmp.lt.s32.totalorder %s1377_s24, %s1815_s14 }
 0x47b   : > { %p1379_p1 = scmp.ne.s32.totalorder %s1377_s24, %s1378_s26  ;;  %p1384_p7 = scmp.lt.s32.totalorder %s1382_s29, %s1378_s26 }
 0x47d   : > { %p1380_p5 = pnand %p1379_p1, %p1588_p13  ;;  %p1385_p9 = por %p1384_p7, %p1383_p8 }
 0x47f   : > { %p1381_p12 = pneg %p1380_p5 }
 0x481   : > { %p1386_p10 = pnand %p1385_p9, %p1381_p12 }
 0x4cb   : > { %v837_v2 = vpop.permute.xlu2 %836 }
 0x4d3   : > { %v833_v63 = vpop.permute.xlu1 %832 }
 0x4d4   : > { %v843_v1 = vsel %vm609_vm5, %v659_v53, %v833_v63 }
 0x4d5   : > { %v845_v4 = vsel %vm844_vm8, %v843_v1, %v837_v2 }
 0x4e3   : > { %v841_v3 = vpop.permute.xlu0 %840 }
 0x4e4   : > { %v847_v5 = vsel %vm846_vm9, %v845_v4, %v841_v3 }
 0x4e5   : > { %v848_v6 = vpack.c.bf16 %v847_v5, %v847_v5 }
 0x4e7   : > { %1156 = vmatmul.msk.bf16.vlgmr.msra.gmra.mxu0 %vm523_vm0, %v848_v6 }
 0x564   : > { %v881_v9 = vpop.f32.mrf.mxu0 }
 0x565   : > { %v882_v10 = vadd.f32 %v1275_v7, %v881_v9 }
 0x567   : > { %v885_v11 = vadd.f32 %v882_v10, %v1638_v0  ;;  %v1196_v0 = vld [vmem:[%s1790_s12 + $0x18] sm:$0xff] }
 0x568   : > { %1001 = vmatpush.bf16.msra.mxu3 %v1196_v0 }
 0x569   : > { %v888_v12 = vsel %vm523_vm0, %v885_v11, 0.0 }
 0x56a   : > { %889 = vadd.xlane.f32.xlu2 %v888_v12 }
 0x56c   : > { %v883_v13 = vpop.f32.mrf.mxu0  ;;  %1002 = vmatpush.bf16.msra.mxu3 %v1195_v23 }
 0x570   : > { %1003 = vmatpush.bf16.msra.mxu3 %v1194_v25 }
 0x574   : > { %1004 = vmatpush.bf16.msra.mxu3 %v1193_v38 }
 0x5dd   : > { %v890_v14 = vpop.xlane.xlu2 %889 }
 0x5de   : > { %v891_v15 = vmul.f32 %v890_v14, %v1642_v8 }
 0x5e0   : > { %v892_v16 = vsub.f32 %v885_v11, %v891_v15 }
 0x5e2   : > { %v893_v17 = vmul.f32 %v892_v16, %v892_v16 }
 0x5e4   : > { %v894_v18 = vsel %vm523_vm0, %v893_v17, 0.0 }
 0x5e5   : > { %895 = vadd.xlane.f32.xlu0 %v894_v18 }
 0x658   : > { %v896_v21 = vpop.xlane.xlu0 %895 }
 0x659   : > { %v897_v22 = vmul.f32 %v896_v21, %v1642_v8 }
 0x65b   : > { %v898_v24 = vadd.f32 1e-05, %v897_v22 }
 0x65d   : > { %1300 = vrsqrt.f32 %v898_v24  ;;  %vm905_vm11 = vweird.f32 %v898_v24 }
 0x663   : > { %v1301_v26 = vpop.eup %1300 }
 0x664   : > { %v900_v27 = vmul.f32 %v1301_v26, %v898_v24  ;;  %vm906_vm10 = vweird.f32 %v1301_v26 }
 0x665   : > { %vm907_vm12 = vmor %vm905_vm11, %vm906_vm10 }
 0x666   : > { %v901_v28 = vmul.f32 %v1301_v26, %v900_v27 }
 0x668   : > { %v902_v29 = vmul.f32 0.5, %v901_v28 }
 0x66a   : > { %v903_v30 = vsub.f32 1.5, %v902_v29 }
 0x66c   : > { %v904_v8 = vmul.f32 %v1301_v26, %v903_v30 }
 0x66e   : > { %v908_v32 = vsel %vm907_vm12, %v1301_v26, %v904_v8 }
 0x66f   : > { %v909_v33 = vmul.f32 %v908_v32, %v892_v16 }
 0x671   : > { %v913_v35 = vmul.f32 %v1276_v31, %v909_v33 }
 0x673   : > { %v917_v36 = vadd.f32 %v1277_v34, %v913_v35 }
 0x675   : > { %v918_v37 = vpack.c.bf16 %v917_v36, %v917_v36 }
 0x677   : > { %1165 = vmatmul.msk.bf16.vlgmr.msra.gmra.mxu1 %vm523_vm0, %v918_v37 }
 0x6f4   : > { %v951_v40 = vpop.f32.mrf.mxu1 }
 0x6f5   : > { %v952_v41 = vadd.f32 %v1278_v39, %v951_v40 }
 0x6f7   : > { %v955_v42 = vmax.f32 %v952_v41, 0.0 }
 0x6f9   : > { %v956_v43 = vpack.c.bf16 %v955_v42, %v955_v42 }
 0x6fb   : > { %1182 = vmatmul.msk.bf16.vlgmr.msra.gmra.mxu3 %vm993_vm13, %v956_v43 }
 0x6fc   : > { %v953_v44 = vpop.f32.mrf.mxu1 }
 0x77e   : > { %v1006_v46 = vpop.f32.mrf.mxu3 }
 0x77f   : > { %v1007_v47 = vadd.f32 %v1279_v45, %v1006_v46 }
 0x781   : > { %v1010_v48 = vadd.f32 %v1007_v47, %v885_v11 }
 0x783   : > { %1011 = vst.msk [vmem:[%s514_s27] sm:$0xff] %vm523_vm0, %v1010_v48 }
 0x784   : > { %1389 = shalt.err (!%p1386_p10)
}
 0x785   : > { %1203 = dma.vmem_to_hbm [thread:$0]  (%p1588_p13), %s1026_s19, 128, %s1028_s22, %s1013_s20  }
 0x786   : > { %v1008_v49 = vpop.f32.mrf.mxu3 }
 0x787 PF: > { %s1817_s23 = sld [smem:[#allocation11_spill]]  ;;  %p1819_p11 = scmp.ge.s32.totalorder %s1432_s16, 2 }
 0x789   : > { %p1214_p0 = pnand %p1819_p11, %p1593_p4 }
 0x78b   : > { %p1215_p2 = pneg %p1214_p0 }
 0x78d   : > { %s1039_s21 = sand.u32 1, %s1817_s23  }
 0x78e   : > { %s1040_s27 = scalar_lea.sflag [#allocation4], %s1039_s21 }
 0x78f   : > { %1415 = dma.done.wait (%p1215_p2), %s1040_s27, 128  }
 0x790   : > { %1417 = vsyncadd (%p1215_p2), %s1040_s27, 4294967168  ;;  %s1820_s16 = sld [smem:[#allocation13_spill]]  ;;  %s1823_s29 = smov %s1424_s30 }
 0x791   : > { %s1821_s24 = sld [smem:[#allocation12_spill]] }
 0x792   : > { %s1822_s15 = sld [smem:[#allocation14_spill]] }
 0x796   : > { %p28_p6 = scmp.ge.s32.totalorder %s1820_s16, 4  }
 0x797   : > { %s1824_s30 = smov %s1821_s24 }
 0x798   :  { %30 = sbr.rel (!%p28_p6) target bundleno = 9 (0x9), region = 128 }
 0x79d   :  { %1046 = vsyncpa [#allocation3], 1 }
 0x79e   :  { %1048 = vsyncpa [#allocation3 + $0x1], 1 }
 0x79f   :  { %1049 = vsyncpa [#allocation6], 1 }
 0x7a0   :  { %1050 = vsyncpa [#allocation4], 1 }
 0x7a1   :  { %1052 = vsyncpa [#allocation4 + $0x1], 1 }

</bundles_post_ra>
